<compile_context>
chip_gen: v5e
topology: v5e:2x2
jax: 0.10.0
libtpu: 0.0.40
codegen_flags: <defaults>
</compile_context>

<pallas_src>
import jax
import jax.numpy as jnp
import numpy as np
from jax.experimental import pallas as pl
from jax.experimental.pallas import tpu as pltpu


_LANE = 128
_TARGET_TILE_BYTES = 8 * 1024 * 1024    # ~8 MiB per tile; 4x (double-buffered in+out) = 32 MiB
_VMEM_LIMIT_BYTES = 40 * 1024 * 1024    # 32 MiB footprint + headroom; fits v7x's 64 MiB VMEM


def _identity_kernel(x_ref, o_ref):
    # Pure streaming copy: one full-width VMEM load + one full-width VMEM store per tile.
    o_ref[...] = x_ref[...]


def _round_down(x: int, m: int) -> int:
    return (x // m) * m


def _choose_2d(total: int):
    """Lane-dense (rows, lanes) factorization of `total` elements, no padding.

    Returns (rows, lanes) with lanes a multiple of 128, or None if total is not
    divisible by 128 (caller falls back to returning x — identity is free anyway).
    """
    for lanes in (4096, 2048, 1024, 512, 256, 128):
        if total % lanes == 0:
            return total // lanes, lanes
    return None


def _identity_copy(x: jax.Array) -> jax.Array:
    """Materialized copy of x via a lane-dense, tiled Pallas streaming kernel."""
    orig_shape = x.shape
    total = x.size
    itemsize = jnp.dtype(x.dtype).itemsize

    if total == 0:
        return x

    factored = _choose_2d(total)
    if factored is None:
        # Not 128-divisible: skip the kernel rather than pay pad + slice HBM passes.
        return x
    rows, lanes = factored

    # Packed-sublane multiple for this dtype: 8 (32-bit), 16 (bf16/fp16), 32 (int8/fp8).
    sub = max(8, 32 // itemsize)

    if rows <= sub:
        tile_rows = rows  # full-extent block; exempt from the (8, 128) divisibility rule
    else:
        tile_rows = _round_down(_TARGET_TILE_BYTES // (lanes * itemsize), sub)
        tile_rows = max(sub, min(tile_rows, _round_down(rows, sub)))
        # Guarantee >= 4 blocks (>= 2 per TensorCore on v7x) when the array allows it,
        # so read and write DMA streams overlap on both cores.
        if pl.cdiv(rows, tile_rows) < 4 and rows >= 4 * sub:
            tile_rows = max(sub, _round_down(pl.cdiv(rows, 4), sub))

    grid = (pl.cdiv(rows, tile_rows),)

    x2d = x.reshape(rows, lanes)  # metadata-only under jit

    out2d = pl.pallas_call(
        _identity_kernel,
        out_shape=jax.ShapeDtypeStruct((rows, lanes), x2d.dtype),
        grid_spec=pltpu.PrefetchScalarGridSpec(
            num_scalar_prefetch=0,
            grid=grid,
            in_specs=[pl.BlockSpec((tile_rows, lanes), lambda i: (i, 0))],
            out_specs=pl.BlockSpec((tile_rows, lanes), lambda i: (i, 0)),
        ),
        compiler_params=pltpu.CompilerParams(
            dimension_semantics=("parallel",),
            vmem_limit_bytes=_VMEM_LIMIT_BYTES,
        ),
    )(x2d)

    return out2d.reshape(orig_shape)


# jit so the reshapes around pallas_call are bitcasts; retraces per (shape, dtype).
_identity_copy_jit = jax.jit(_identity_copy)


def identity(x: jax.Array, *, force_copy: bool = False) -> jax.Array:
    """Pallas implementation of Identity.forward: returns x unchanged.

    By default this never launches a kernel — identity is semantically free, and any
    copy kernel would move 2*N bytes of HBM for nothing. Pass force_copy=True to get
    a freshly materialized buffer produced by the Pallas streaming-copy kernel.
    """
    if not force_copy:
        return x
    return _identity_copy_jit(x)


if __name__ == "__main__":
    key = jax.random.PRNGKey(0)

    # Small NCHW input matching the original module's usage: batch=2, channels=4, 16x16.
    x_small = jax.random.normal(key, (2, 4, 16, 16), dtype=jnp.float32)
    x_small_host = np.asarray(x_small)

    # Default path: identity is a no-op — returns the input directly, no kernel launch.
    y_default = identity(x_small)
    assert y_default is x_small, "default path should return the input directly"

    # Forced Pallas copy path (exercises the kernel).
    y_small = identity(x_small, force_copy=True)
    jax.block_until_ready(y_small)
    assert y_small.shape == (2, 4, 16, 16), f"shape mismatch: {y_small.shape}"
    assert y_small.dtype == jnp.float32, f"dtype mismatch: {y_small.dtype}"
    assert np.array_equal(np.asarray(y_small), x_small_host), "identity mismatch (small)"

    # Larger f32 input to exercise the multi-block tiled path (2 MiB, grid >= 4).
    x_big = jax.random.normal(jax.random.PRNGKey(0), (8, 8, 64, 128), dtype=jnp.float32)
    x_big_host = np.asarray(x_big)
    y_big = identity(x_big, force_copy=True)
    jax.block_until_ready(y_big)
    assert y_big.shape == x_big.shape and y_big.dtype == x_big.dtype
    assert np.array_equal(np.asarray(y_big), x_big_host), "identity mismatch (big f32)"

    # bf16 input to exercise the packed-sublane (16) tile rounding.
    x_bf16 = jax.random.normal(jax.random.PRNGKey(0), (4, 256, 256)).astype(jnp.bfloat16)
    x_bf16_host = np.asarray(x_bf16)
    y_bf16 = identity(x_bf16, force_copy=True)
    jax.block_until_ready(y_bf16)
    assert y_bf16.shape == x_bf16.shape and y_bf16.dtype == jnp.bfloat16
    assert np.array_equal(np.asarray(y_bf16), x_bf16_host), "identity mismatch (bf16)"

    # Non-128-divisible element count: falls back to returning x (no pad/slice passes).
    x_ragged = jax.random.normal(jax.random.PRNGKey(0), (3, 5), dtype=jnp.float32)
    y_ragged = identity(x_ragged, force_copy=True)
    jax.block_until_ready(y_ragged)
    assert np.array_equal(np.asarray(y_ragged), np.asarray(x_ragged))

    print("KERNEL_OK")
</pallas_src>

<mosaic_0001>
module attributes {stable_mosaic.version = 11 : i64} {
  func.func @_identity_kernel(%arg0: i32, %arg1: memref<1x2048xf32, #tpu.memory_space<vmem>>, %arg2: memref<1x2048xf32, #tpu.memory_space<vmem>>) attributes {dimension_semantics = [#tpu.dimension_semantics<parallel>], iteration_bounds = array<i64: 1>, scalar_prefetch = 0 : i64, scratch_operands = 0 : i64, tpu.core_type = #tpu.core_type<tc>, window_params = [{transform_indices = @transform_0, window_bounds = array<i64: 1, 2048>}, {transform_indices = @transform_1, window_bounds = array<i64: 1, 2048>}]} {
    %c0 = arith.constant 0 : index
    %c0_0 = arith.constant 0 : index
    %0 = vector.load %arg1[%c0, %c0_0] : memref<1x2048xf32, #tpu.memory_space<vmem>>, vector<1x2048xf32>
    %c0_1 = arith.constant 0 : index
    %c0_2 = arith.constant 0 : index
    %1 = vector.load %arg2[%c0_1, %c0_2] : memref<1x2048xf32, #tpu.memory_space<vmem>>, vector<1x2048xf32>
    tpu.vector_store %arg2[%c0_1, %c0_2], %0 {strides = array<i32>} : memref<1x2048xf32, #tpu.memory_space<vmem>>, vector<1x2048xf32>,
    return
  }
  func.func @transform_0(%arg0: i32) -> (i32, i32) {
    %c0_i32 = arith.constant 0 : i32
    %c0_i32_0 = arith.constant 0 : i32
    return %arg0, %c0_i32 : i32, i32
  }
  func.func @transform_1(%arg0: i32) -> (i32, i32) {
    %c0_i32 = arith.constant 0 : i32
    %c0_i32_0 = arith.constant 0 : i32
    return %arg0, %c0_i32 : i32, i32
  }
}

</mosaic_0001>

<bundles_post_ra>
// kernel: _identity_copy.1
= control target key start
LH: loop header
LB: loop body
LE: loop exit
PB: predicated region body
PF: predicated region fallthrough
CT: control target
= control target key end

     0   :  { %s38_s0 = inlined_call_operand.vmem [shape: f32[1,2048], index: 0, kind: input, shape index: {}]   ;;  %s39_s1 = inlined_call_operand.vmem [shape: f32[1,2048], index: 1, kind: output, shape index: {}]  }
   0x1   :  { %v8_v0 = vld [vmem:[%s38_s0] sm:$0xff]  ;;  %v9_v1 = vld [vmem:[%s38_s0 + $0x8] sm:$0xff] }
   0x2   :  { %10 = vst [vmem:[%s39_s1] sm:$0xff] %v8_v0 }
   0x3   :  { %11 = vst [vmem:[%s39_s1 + $0x8] sm:$0xff] %v9_v1 }

</bundles_post_ra>
